<compile_context>
chip_gen: v5e
topology: v5e:2x2
jax: 0.10.0
libtpu: 0.0.40
codegen_flags: <defaults>
</compile_context>

<pallas_src>
import functools

import numpy as np
import jax
import jax.numpy as jnp
from jax.experimental import pallas as pl
from jax.experimental.pallas import tpu as pltpu


def _round_up(x, m):
    return (x + m - 1) // m * m


def _encoder_kernel(x_ref, w_ref, b_ref, o_ref, *, normalize):
    # x_ref: (tm, K) compute dtype | w_ref: (K, N) compute dtype (VMEM-resident,
    # block-invariant) | b_ref: (1, N) f32 | o_ref: (tm, N) f32.
    feats = jnp.dot(x_ref[...], w_ref[...], preferred_element_type=jnp.float32)
    feats = feats + b_ref[...]                       # broadcast bias over rows (f32)
    if normalize:
        # l2norm over the FULL embed dim (N is never tiled, so the row sum is complete).
        sq_sum = jnp.sum(feats * feats, axis=-1, keepdims=True)       # (tm, 1)
        # Exact reciprocal keeps the sqrt()+eps-then-divide semantics within rtol=1e-5;
        # one reciprocal per row + a broadcast multiply instead of a full-tile divide.
        inv = pl.reciprocal(jnp.sqrt(sq_sum) + 1e-8, approx=False)
        feats = feats * inv
    o_ref[...] = feats.astype(o_ref.dtype)


def encoder_image_precomp(images, weight_t, bias, *, no_imgnorm=False,
                          compute_dtype=jnp.float32, tm=512):
    """Forward pass of EncoderImagePrecomp.

    images:   (..., img_dim) float32
    weight_t: (img_dim, embed_size)  -- PyTorch fc.weight transposed ONCE at load time
    bias:     (embed_size,)
    compute_dtype: MXU operand dtype (jnp.float32 or jnp.bfloat16); accumulation
                   and the normalization are always f32.
    """
    img_dim = images.shape[-1]
    embed_size = weight_t.shape[-1]
    lead_shape = images.shape[:-1]
    M = int(np.prod(lead_shape)) if lead_shape else 1

    # Lane/sublane alignment: pad K and N to multiples of 128, rows to the tile.
    K_pad = _round_up(img_dim, 128)
    N_pad = _round_up(embed_size, 128)
    tm = _round_up(min(int(tm), _round_up(M, 16)), 16)
    M_pad = _round_up(M, tm)

    x2d = images.reshape(M, img_dim).astype(compute_dtype)
    w2d = weight_t.astype(compute_dtype)
    b2d = bias.reshape(1, embed_size).astype(jnp.float32)

    if (M_pad, K_pad) != (M, img_dim):
        x2d = jnp.pad(x2d, ((0, M_pad - M), (0, K_pad - img_dim)))
    if (K_pad, N_pad) != (img_dim, embed_size):
        w2d = jnp.pad(w2d, ((0, K_pad - img_dim), (0, N_pad - embed_size)))
    if N_pad != embed_size:
        b2d = jnp.pad(b2d, ((0, 0), (0, N_pad - embed_size)))

    # VMEM budget: double-buffered x/out tiles + resident weight (counted x2 to be
    # conservative) + bias.  Clamped to v7x's 64 MiB physical VMEM.
    in_bytes = jnp.dtype(compute_dtype).itemsize
    est = (2 * tm * K_pad * in_bytes        # x tiles (double buffered)
           + 2 * K_pad * N_pad * in_bytes   # resident weight (conservative x2)
           + 2 * N_pad * 4                  # bias
           + 2 * tm * N_pad * 4)            # out tiles (double buffered)
    vmem_limit = int(min(max(est * 3 // 2, 32 * 1024 * 1024), 64 * 1024 * 1024))

    grid = (M_pad // tm,)
    kernel = functools.partial(_encoder_kernel, normalize=not no_imgnorm)

    out2d = pl.pallas_call(
        kernel,
        out_shape=jax.ShapeDtypeStruct((M_pad, N_pad), jnp.float32),
        grid=grid,
        in_specs=[
            pl.BlockSpec((tm, K_pad), lambda i: (i, 0)),      # streamed row tiles
            pl.BlockSpec((K_pad, N_pad), lambda i: (0, 0)),   # weight, block-invariant
            pl.BlockSpec((1, N_pad), lambda i: (0, 0)),       # bias, block-invariant
        ],
        out_specs=pl.BlockSpec((tm, N_pad), lambda i: (i, 0)),
        compiler_params=pltpu.CompilerParams(
            dimension_semantics=("parallel",),
            vmem_limit_bytes=vmem_limit,
        ),
    )(x2d, w2d, b2d)

    out = out2d[:M, :embed_size]
    return out.reshape(*lead_shape, embed_size)


def init_params(key, img_dim, embed_size):
    """Xavier init matching the PyTorch init_weights(); weight stored pre-transposed."""
    r = np.sqrt(6.0) / np.sqrt(img_dim + embed_size)
    weight_t = jax.random.uniform(key, (img_dim, embed_size),
                                  minval=-r, maxval=r, dtype=jnp.float32)
    bias = jnp.zeros((embed_size,), dtype=jnp.float32)
    return weight_t, bias


if __name__ == "__main__":
    key = jax.random.PRNGKey(0)
    k_w, k_x = jax.random.split(key)

    batch, n_regions, img_dim, embed_size = 2, 8, 32, 64
    weight_t, bias = init_params(k_w, img_dim, embed_size)   # (img_dim, embed_size)
    images = jax.random.normal(k_x, (batch, n_regions, img_dim), dtype=jnp.float32)

    # --- default (f32) normalized path ---
    out = jax.block_until_ready(encoder_image_precomp(images, weight_t, bias))
    feats_ref = images @ weight_t + bias
    norm_ref = jnp.sqrt(jnp.sum(feats_ref ** 2, axis=-1, keepdims=True)) + 1e-8
    ref = feats_ref / norm_ref
    np.testing.assert_allclose(np.asarray(out), np.asarray(ref), rtol=1e-5, atol=1e-5)

    # --- no_imgnorm path (same tiled builder) ---
    out_nn = jax.block_until_ready(
        encoder_image_precomp(images, weight_t, bias, no_imgnorm=True))
    np.testing.assert_allclose(np.asarray(out_nn), np.asarray(feats_ref),
                               rtol=1e-5, atol=1e-5)

    # --- bf16 MXU operands, f32 accumulation / normalization ---
    out_bf = jax.block_until_ready(
        encoder_image_precomp(images, weight_t, bias, compute_dtype=jnp.bfloat16))
    feats_bf = (images.astype(jnp.bfloat16).astype(jnp.float32)
                @ weight_t.astype(jnp.bfloat16).astype(jnp.float32) + bias)
    ref_bf = feats_bf / (jnp.sqrt(jnp.sum(feats_bf ** 2, -1, keepdims=True)) + 1e-8)
    np.testing.assert_allclose(np.asarray(out_bf), np.asarray(ref_bf),
                               rtol=1e-2, atol=1e-2)

    print("KERNEL_OK")
</pallas_src>

<mosaic_0001>
module attributes {stable_mosaic.version = 11 : i64} {
  func.func @_encoder_kernel(%arg0: i32, %arg1: memref<16x128xf32, #tpu.memory_space<vmem>>, %arg2: memref<128x128xf32, #tpu.memory_space<vmem>>, %arg3: memref<1x128xf32, #tpu.memory_space<vmem>>, %arg4: memref<16x128xf32, #tpu.memory_space<vmem>>) attributes {dimension_semantics = [#tpu.dimension_semantics<parallel>], iteration_bounds = array<i64: 1>, scalar_prefetch = 0 : i64, scratch_operands = 0 : i64, tpu.core_type = #tpu.core_type<tc>, window_params = [{transform_indices = @transform_0, window_bounds = array<i64: 16, 128>}, {pipeline_mode = #tpu.pipeline_mode<synchronous>, transform_indices = @transform_1, window_bounds = array<i64: 128, 128>}, {pipeline_mode = #tpu.pipeline_mode<synchronous>, transform_indices = @transform_2, window_bounds = array<i64: 1, 128>}, {transform_indices = @transform_3, window_bounds = array<i64: 16, 128>}]} {
    %c0 = arith.constant 0 : index
    %c0_0 = arith.constant 0 : index
    %0 = vector.load %arg1[%c0, %c0_0] : memref<16x128xf32, #tpu.memory_space<vmem>>, vector<16x128xf32>
    %c0_1 = arith.constant 0 : index
    %c0_2 = arith.constant 0 : index
    %1 = vector.load %arg2[%c0_1, %c0_2] : memref<128x128xf32, #tpu.memory_space<vmem>>, vector<128x128xf32>
    %cst = arith.constant dense<0.000000e+00> : vector<16x128xf32>
    %2 = tpu.matmul %0, %1, %cst {dimension_numbers = #tpu.dot_dimension_numbers<[1], [0], [0], [1], [0, 0, 1, 1], [], []>} : vector<16x128xf32>, vector<128x128xf32>, vector<16x128xf32> -> vector<16x128xf32>
    %c0_3 = arith.constant 0 : index
    %c0_4 = arith.constant 0 : index
    %3 = vector.load %arg3[%c0_3, %c0_4] : memref<1x128xf32, #tpu.memory_space<vmem>>, vector<1x128xf32>
    %4 = vector.broadcast %3 : vector<1x128xf32> to vector<16x128xf32>
    %5 = arith.addf %2, %4 : vector<16x128xf32>
    %6 = arith.mulf %5, %5 : vector<16x128xf32>
    %cst_5 = arith.constant dense<0.000000e+00> : vector<16xf32>
    %7 = vector.multi_reduction <add>, %6, %cst_5 [1] : vector<16x128xf32> to vector<16xf32>
    %8 = vector.shape_cast %7 : vector<16xf32> to vector<16x1xf32>
    %9 = math.sqrt %8 : vector<16x1xf32>
    %cst_6 = arith.constant 9.99999993E-9 : f32
    %10 = vector.broadcast %cst_6 : f32 to vector<16x1xf32>
    %11 = arith.addf %9, %10 : vector<16x1xf32>
    %12 = tpu.reciprocal %11 : vector<16x1xf32> -> vector<16x1xf32>
    %13 = vector.broadcast %12 : vector<16x1xf32> to vector<16x128xf32>
    %14 = arith.mulf %5, %13 : vector<16x128xf32>
    %c0_7 = arith.constant 0 : index
    %c0_8 = arith.constant 0 : index
    %15 = vector.load %arg4[%c0_7, %c0_8] : memref<16x128xf32, #tpu.memory_space<vmem>>, vector<16x128xf32>
    tpu.vector_store %arg4[%c0_7, %c0_8], %14 {strides = array<i32>} : memref<16x128xf32, #tpu.memory_space<vmem>>, vector<16x128xf32>,
    return
  }
  func.func @transform_0(%arg0: i32) -> (i32, i32) {
    %c0_i32 = arith.constant 0 : i32
    %c0_i32_0 = arith.constant 0 : i32
    return %arg0, %c0_i32 : i32, i32
  }
  func.func @transform_1(%arg0: i32) -> (i32, i32) {
    %c0_i32 = arith.constant 0 : i32
    %c0_i32_0 = arith.constant 0 : i32
    %c0_i32_1 = arith.constant 0 : i32
    return %c0_i32, %c0_i32_0 : i32, i32
  }
  func.func @transform_2(%arg0: i32) -> (i32, i32) {
    %c0_i32 = arith.constant 0 : i32
    %c0_i32_0 = arith.constant 0 : i32
    %c0_i32_1 = arith.constant 0 : i32
    return %c0_i32, %c0_i32_0 : i32, i32
  }
  func.func @transform_3(%arg0: i32) -> (i32, i32) {
    %c0_i32 = arith.constant 0 : i32
    %c0_i32_0 = arith.constant 0 : i32
    return %arg0, %c0_i32 : i32, i32
  }
}

</mosaic_0001>

<bundles_post_ra>
// kernel: tpu_custom_call.1
= control target key start
LH: loop header
LB: loop body
LE: loop exit
PB: predicated region body
PF: predicated region fallthrough
CT: control target
= control target key end

     0   :  { %8 = vsyncpa [#allocation3], 0  ;;  %s335_s0 = inlined_call_operand.hbm [shape: f32[16,128], index: 0, kind: input, shape index: {}]   ;;  %s336_s1 = inlined_call_operand.hbm [shape: f32[128,128], index: 1, kind: input, shape index: {}]   ;;  %s337_s2 = inlined_call_operand.vmem [shape: f32[1,128], index: 2, kind: input, shape index: {}]   ;;  %s338_s3 = inlined_call_operand.hbm [shape: f32[16,128], index: 3, kind: output, shape index: {}]  }
   0x1   :  { %9 = vsyncpa [#allocation6], 0 }
   0x2   :  { %10 = vsyncpa [#allocation4], 0  ;;  %s15_s14 = sshll.u32 %s335_s0, 4  ;;  %s284_s15 = smov [#allocation2]   ;;  %s16_s14 = int_to_ptr.hbm [resolvable:$true] %s15_s14 }
   0x3   :  { %s17_s16 = sshll.u32 %s284_s15, 4  ;;  %s28_s19 = sshll.u32 %s336_s1, 4  ;;  %s18_s16 = int_to_ptr.vmem [resolvable:$true] %s17_s16  ;;  %s29_s19 = int_to_ptr.hbm [resolvable:$true] %s28_s19 }
   0x4   :  { %s285_s20 = smov 128   ;;  %s286_s21 = smov 8  }
   0x5   :  { %23 = dma.hbm_to_vmem [thread:$0]  %s16_s14, 256, %s18_s16, [#allocation3], %s285_s20, %s285_s20, %s286_s21  }
   0x6   :  { %s287_s22 = smov [#allocation5]  }
   0x7   :  { %s30_s23 = sshll.u32 %s287_s22, 4  ;;  %s31_s23 = int_to_ptr.vmem [resolvable:$true] %s30_s23 }
   0x8   :  { %36 = dma.hbm_to_vmem [thread:$0]  %s29_s19, 2048, %s31_s23, [#allocation6], %s285_s20, %s285_s20, %s286_s21  }
   0x9   :  { %278 = dma.done.wait [#allocation3], 256  }
   0xa   :  { %279 = vsyncadd [#allocation3], 4294967040 }
   0xb   :  { %280 = dma.done.wait [#allocation6], 2048  }
   0xc   :  { %281 = vsyncadd [#allocation6], 4294965248  ;;  %v64_v0 = vld [vmem:[#allocation5 + $0x78] sm:$0xff]  ;;  %v63_v1 = vld [vmem:[#allocation5 + $0x70] sm:$0xff]  ;;  %s162_s27 = sshll.u32 %s338_s3, 4  ;;  %s163_s27 = int_to_ptr.hbm [resolvable:$true] %s162_s27 }
   0xd   :  { %69 = vmatpush.msra.mxu0 %v64_v0  ;;  %176 = vmatpush.msra.mxu1 %v64_v0  ;;  %v62_v2 = vld [vmem:[#allocation5 + $0x68] sm:$0xff]  ;;  %v61_v3 = vld [vmem:[#allocation5 + $0x60] sm:$0xff]  ;;  %v60_v4 = vld [vmem:[#allocation5 + $0x58] sm:$0xff] }
   0xe   :  { %v59_v5 = vld [vmem:[#allocation5 + $0x50] sm:$0xff]  ;;  %v58_v6 = vld [vmem:[#allocation5 + $0x48] sm:$0xff]  ;;  %v57_v7 = vld [vmem:[#allocation5 + $0x40] sm:$0xff] }
   0xf   :  { %70 = vmatpush.msra.mxu0 %v63_v1  ;;  %177 = vmatpush.msra.mxu1 %v63_v1  ;;  %v56_v8 = vld [vmem:[#allocation5 + $0x38] sm:$0xff]  ;;  %v55_v9 = vld [vmem:[#allocation5 + $0x30] sm:$0xff]  ;;  %v54_v10 = vld [vmem:[#allocation5 + $0x28] sm:$0xff] }
  0x10   :  { %v53_v11 = vld [vmem:[#allocation5 + $0x20] sm:$0xff]  ;;  %v52_v12 = vld [vmem:[#allocation5 + $0x18] sm:$0xff]  ;;  %v51_v13 = vld [vmem:[#allocation5 + $0x10] sm:$0xff] }
  0x11   :  { %71 = vmatpush.msra.mxu0 %v62_v2  ;;  %178 = vmatpush.msra.mxu1 %v62_v2  ;;  %v50_v14 = vld [vmem:[#allocation5 + $0x8] sm:$0xff]  ;;  %v49_v15 = vld [vmem:[#allocation5] sm:$0xff]  ;;  %v47_v16 = vld [vmem:[#allocation2] sm:$0xff] }
  0x12   :  { %v48_v17 = vld [vmem:[#allocation2 + $0x8] sm:$0xff]  ;;  %v197_v18 = vld [vmem:[%s337_s2] ss:$0 sm:$0xff]  ;;  %s288_s2 = smov [#allocation7]  }
  0x13   :  { %72 = vmatpush.msra.mxu0 %v61_v3  ;;  %179 = vmatpush.msra.mxu1 %v61_v3  ;;  %s160_s24 = sshll.u32 %s288_s2, 4  ;;  %s161_s24 = int_to_ptr.vmem [resolvable:$true] %s160_s24 }
  0x15   :  { %73 = vmatpush.msra.mxu0 %v60_v4  ;;  %180 = vmatpush.msra.mxu1 %v60_v4 }
  0x17   :  { %74 = vmatpush.msra.mxu0 %v59_v5  ;;  %181 = vmatpush.msra.mxu1 %v59_v5 }
  0x19   :  { %75 = vmatpush.msra.mxu0 %v58_v6  ;;  %182 = vmatpush.msra.mxu1 %v58_v6 }
  0x1b   :  { %76 = vmatpush.msra.mxu0 %v57_v7  ;;  %183 = vmatpush.msra.mxu1 %v57_v7 }
  0x1d   :  { %77 = vmatpush.msra.mxu0 %v56_v8  ;;  %184 = vmatpush.msra.mxu1 %v56_v8 }
  0x1f   :  { %78 = vmatpush.msra.mxu0 %v55_v9  ;;  %185 = vmatpush.msra.mxu1 %v55_v9 }
  0x21   :  { %79 = vmatpush.msra.mxu0 %v54_v10  ;;  %186 = vmatpush.msra.mxu1 %v54_v10 }
  0x23   :  { %80 = vmatpush.msra.mxu0 %v53_v11  ;;  %187 = vmatpush.msra.mxu1 %v53_v11 }
  0x25   :  { %81 = vmatpush.msra.mxu0 %v52_v12  ;;  %188 = vmatpush.msra.mxu1 %v52_v12 }
  0x27   :  { %82 = vmatpush.msra.mxu0 %v51_v13  ;;  %189 = vmatpush.msra.mxu1 %v51_v13 }
  0x29   :  { %83 = vmatpush.msra.mxu0 %v50_v14  ;;  %190 = vmatpush.msra.mxu1 %v50_v14 }
  0x2b   :  { %84 = vmatpush.msra.mxu0 %v49_v15  ;;  %191 = vmatpush.msra.mxu1 %v49_v15 }
  0x2c   :  { %85 = vmatmul.f32.vlgmr.msra.gmra.mxu0 %v47_v16  ;;  %88 = vmatmul.f32.vlgmr.msra.gmra.mxu1 %v48_v17 }
  0xa9   :  { %v86_v19 = vpop.f32.mrf.mxu0  ;;  %v89_v21 = vpop.f32.mrf.mxu1 }
  0xaa   :  { %v87_v20 = vadd.f32 %v197_v18, %v86_v19  ;;  %v324_v23 = vadd.f32 %v197_v18, %v89_v21 }
  0xac   :  { %v92_v22 = vmul.f32 %v87_v20, %v87_v20  ;;  %v93_v24 = vmul.f32 %v324_v23, %v324_v23 }
  0xae   :  { %94 = vadd.xlane.f32.xlu0 %v92_v22 }
  0xb6   :  { %96 = vadd.xlane.f32.xlu0 %v93_v24 }
 0x121   :  { %v95_v25 = vpop.xlane.xlu0 %94 }
 0x122   :  { %198 = vrsqrt.f32 %v95_v25  ;;  %vm105_vm0 = vcmp.eq.f32.partialorder %v95_v25, inf  ;;  %v108_v37 = vand.u32 2147483648, %v95_v25  ;;  %vm107_vm1 = vcmp.eq.f32.partialorder %v95_v25, 0.0 }
 0x128   :  { %v199_v26 = vpop.eup %198 }
 0x129   :  { %v99_v27 = vmul.f32 %v199_v26, %v95_v25  ;;  %v97_v28 = vpop.xlane.xlu0 %96 }
 0x12a   :  { %200 = vrsqrt.f32 %v97_v28  ;;  %vm117_vm2 = vcmp.eq.f32.partialorder %v97_v28, inf  ;;  %v120_v45 = vand.u32 2147483648, %v97_v28  ;;  %vm119_vm3 = vcmp.eq.f32.partialorder %v97_v28, 0.0 }
 0x12b   :  { %v100_v29 = vmul.f32 %v199_v26, %v99_v27 }
 0x12d   :  { %v101_v30 = vmul.f32 0.5, %v100_v29 }
 0x12f   :  { %v102_v31 = vsub.f32 1.5, %v101_v30 }
 0x130   :  { %v201_v32 = vpop.eup %200 }
 0x131   :  { %v103_v33 = vmul.f32 %v199_v26, %v102_v31  ;;  %v111_v34 = vmul.f32 %v201_v32, %v97_v28 }
 0x133   :  { %v104_v35 = vmul.f32 %v103_v33, %v95_v25  ;;  %v112_v36 = vmul.f32 %v201_v32, %v111_v34 }
 0x135   :  { %v106_v38 = vsel %vm105_vm0, %v95_v25, %v104_v35  ;;  %v113_v39 = vmul.f32 0.5, %v112_v36 }
 0x136   :  { %v109_v40 = vsel %vm107_vm1, %v108_v37, %v106_v38 }
 0x137   :  { %v122_v41 = vadd.f32 1e-08, %v109_v40  ;;  %v114_v42 = vsub.f32 1.5, %v113_v39 }
 0x139   :  { %202 = vrcp.f32 %v122_v41  ;;  %v115_v43 = vmul.f32 %v201_v32, %v114_v42  ;;  %v135_v52 = vand.u32 2147483648, %v122_v41  ;;  %v133_v54 = vand.u32 2147483647, %v122_v41 }
 0x13a   :  { %vm129_vm5 = vweird.f32 %v122_v41 }
 0x13b   :  { %v116_v44 = vmul.f32 %v115_v43, %v97_v28  ;;  %v136_v57 = vor.u32 1.1754944e-38, %v135_v52  ;;  %vm134_vm7 = vcmp.eq.f32.partialorder %v133_v54, 8.507059e+37 }
 0x13d   :  { %v118_v46 = vsel %vm117_vm2, %v97_v28, %v116_v44 }
 0x13e   :  { %v121_v47 = vsel %vm119_vm3, %v120_v45, %v118_v46 }
 0x13f   :  { %v203_v48 = vpop.eup %202  ;;  %v123_v49 = vadd.f32 1e-08, %v121_v47 }
 0x140   :  { %v125_v50 = vmul.f32 %v203_v48, %v122_v41  ;;  %vm130_vm4 = vweird.f32 %v203_v48 }
 0x141   :  { %204 = vrcp.f32 %v123_v49  ;;  %vm131_vm6 = vmor %vm129_vm5, %vm130_vm4  ;;  %v149_v63 = vand.u32 2147483648, %v123_v49  ;;  %v147_v1 = vand.u32 2147483647, %v123_v49  ;;  %vm143_vm9 = vweird.f32 %v123_v49 }
 0x142   :  { %v126_v51 = vsub.f32 1.0, %v125_v50 }
 0x143   :  { %v150_v3 = vor.u32 1.1754944e-38, %v149_v63  ;;  %vm148_vm11 = vcmp.eq.f32.partialorder %v147_v1, 8.507059e+37 }
 0x144   :  { %v127_v53 = vmul.f32 %v203_v48, %v126_v51 }
 0x146   :  { %v128_v55 = vadd.f32 %v203_v48, %v127_v53 }
 0x147   :  { %v205_v56 = vpop.eup %204 }
 0x148   :  { %v132_v58 = vsel %vm131_vm6, %v203_v48, %v128_v55  ;;  %v139_v59 = vmul.f32 %v205_v56, %v123_v49  ;;  %vm144_vm8 = vweird.f32 %v205_v56 }
 0x149   :  { %v137_v60 = vsel %vm134_vm7, %v136_v57, %v132_v58  ;;  %vm145_vm10 = vmor %vm143_vm9, %vm144_vm8 }
 0x14a   :  { %v140_v61 = vsub.f32 1.0, %v139_v59  ;;  %v152_v62 = vmul.f32 %v137_v60, %v87_v20 }
 0x14c   :  { %v141_v0 = vmul.f32 %v205_v56, %v140_v61  ;;  %154 = vst [vmem:[#allocation7] sm:$0xff] %v152_v62 }
 0x14e   :  { %v142_v2 = vadd.f32 %v205_v56, %v141_v0 }
 0x150   :  { %v146_v4 = vsel %vm145_vm10, %v205_v56, %v142_v2 }
 0x151   :  { %v151_v5 = vsel %vm148_vm11, %v150_v3, %v146_v4 }
 0x152   :  { %v153_v6 = vmul.f32 %v151_v5, %v324_v23 }
 0x154   :  { %155 = vst [vmem:[#allocation7 + $0x8] sm:$0xff] %v153_v6 }
 0x155   :  { %168 = dma.vmem_to_hbm [thread:$0]  %s161_s24, 256, %s163_s27, [#allocation4], %s285_s20, %s285_s20, %s286_s21  }
 0x156   :  { %282 = dma.done.wait [#allocation4], 256  }
 0x157   :  { %283 = vsyncadd [#allocation4], 4294967040 }
 0x158   :  { %173 = vsyncpa [#allocation3], 1 }
 0x159   :  { %174 = vsyncpa [#allocation6], 1 }
 0x15a   :  { %175 = vsyncpa [#allocation4], 1 }

</bundles_post_ra>
